<compile_context>
chip_gen: v7x
topology: tpu7x:2x2x1
jax: 0.10.0
libtpu: 0.0.40
codegen_flags: <defaults>
</compile_context>

<pallas_src>
import functools

import numpy as np
import jax
import jax.numpy as jnp
from jax.experimental import pallas as pl
from jax.experimental.pallas import tpu as pltpu

KERNEL_SIZE = 3
MAX_POOL = 2


# ---------------------------------------------------------------------------
# Static helpers
# ---------------------------------------------------------------------------
def get_feature_size(n_conv_layers, length):
    for _ in range(n_conv_layers):
        length = (length - KERNEL_SIZE + 1) // MAX_POOL
    return length


# ---------------------------------------------------------------------------
# Parameter setup (matches the PyTorch module's shapes; weights stored (in,out))
# ---------------------------------------------------------------------------
def init_params(key, input_shape, n_conv_layers, first_conv_layer_size,
                num_dense_layers, first_dense_layer_size, num_labels):
    L, C_in = input_shape  # (seq_len, channels), as in the PyTorch module
    params = {"conv": [], "dense": [], "out": None}

    c_in = C_in
    c_out = first_conv_layer_size
    for i in range(n_conv_layers):
        key, kw, kb = jax.random.split(key, 3)
        w = jax.random.normal(kw, (KERNEL_SIZE, c_in, c_out), jnp.float32) * (1.0 / np.sqrt(c_in * KERNEL_SIZE))
        b = jax.random.normal(kb, (1, c_out), jnp.float32) * 0.05
        params["conv"].append((w, b))
        c_in = c_out
        c_out = c_out * 2

    last_channels = c_in
    feat = get_feature_size(n_conv_layers, L)
    in_f = last_channels * feat

    dense_neurons = first_dense_layer_size
    for i in range(num_dense_layers):
        if i == 0:
            out_f = dense_neurons
        else:
            out_f = dense_neurons // 4
            dense_neurons = out_f
        key, kw, kb = jax.random.split(key, 3)
        w = jax.random.normal(kw, (in_f, out_f), jnp.float32) * (1.0 / np.sqrt(in_f))
        b = jax.random.normal(kb, (1, out_f), jnp.float32) * 0.05
        params["dense"].append((w, b))
        in_f = out_f

    key, kw, kb = jax.random.split(key, 3)
    w = jax.random.normal(kw, (dense_neurons, num_labels), jnp.float32) * (1.0 / np.sqrt(dense_neurons))
    b = jax.random.normal(kb, (1, num_labels), jnp.float32) * 0.05
    params["out"] = (w, b)
    return params


# ---------------------------------------------------------------------------
# One-time host-side operand preparation (cached / reused across calls)
# ---------------------------------------------------------------------------
def prepare_params(params, input_shape):
    """Flatten conv weights to (K*C_in, C_out), permute fc1 for the in-kernel
    t-major flatten, cast all weights to bf16, and pack every bias into a single
    f32 operand.  Done ONCE; the result is reused for every forward call."""
    L, _ = input_shape

    conv_w, conv_dims = [], []
    L_cur = L
    for (w, _b) in params["conv"]:
        K, C_in, C_out = w.shape
        L_conv = L_cur - K + 1
        L_pool = L_conv // MAX_POOL
        conv_dims.append((L_cur, C_in, L_conv, L_pool, C_out))
        conv_w.append(jnp.asarray(w.reshape(K * C_in, C_out), jnp.bfloat16))
        L_cur = L_pool
    L_last = L_cur
    C_last = params["conv"][-1][0].shape[2]

    # fc1: torch flatten index = c*L_last + t; kernel gathers t-major (t*C_last + c)
    fc_w = []
    w1 = params["dense"][0][0]
    O1 = w1.shape[1]
    w1_p = jnp.transpose(w1.reshape(C_last, L_last, O1), (1, 0, 2)).reshape(L_last * C_last, O1)
    fc_w.append(jnp.asarray(w1_p, jnp.bfloat16))
    for (w, _b) in params["dense"][1:]:
        fc_w.append(jnp.asarray(w, jnp.bfloat16))
    out_w = jnp.asarray(params["out"][0], jnp.bfloat16)

    biases = [b for (_, b) in params["conv"]] + [b for (_, b) in params["dense"]] + [params["out"][1]]
    bias_slices, off = [], 0
    for b in biases:
        w_ = int(b.shape[1])
        bias_slices.append((off, w_))
        off += w_
    bias_pack = jnp.concatenate([b.astype(jnp.float32) for b in biases], axis=1)  # (1, total)

    return dict(conv_w=conv_w, fc_w=fc_w, out_w=out_w, bias=bias_pack,
                bias_slices=tuple(bias_slices), conv_dims=tuple(conv_dims),
                L_last=int(L_last), C_last=int(C_last),
                num_labels=int(params["out"][0].shape[1]))


# ---------------------------------------------------------------------------
# Fused Pallas kernel (whole forward pass; all intermediates in VMEM/vregs)
# ---------------------------------------------------------------------------
def _make_kernel(Bb, conv_dims, L_last, C_last, n_dense, bias_slices):
    K = KERNEL_SIZE
    n_w = len(conv_dims) + n_dense + 1  # conv weights + dense weights + output weight

    def kernel(*refs):
        x_ref, bias_ref = refs[0], refs[1]
        w_refs = refs[2:2 + n_w]
        o_ref = refs[2 + n_w]
        s_in, s_act = refs[2 + n_w + 1], refs[2 + n_w + 2]   # VMEM scratch (f32)

        bias_all = bias_ref[...]                 # (1, total_bias) f32
        bi = iter(bias_slices)
        wi = iter(w_refs)

        # Activations in row layout (Bb*L, C), row index = b*L + t, kept in f32.
        h = x_ref[...]

        # ---- conv blocks: Conv1d(k=3) -> ReLU -> MaxPool1d(2) ----
        for (L_in, C_in, L_conv, L_pool, C_out) in conv_dims:
            # stage layer input so shifted windows are plain static ref slices
            s_in[0:Bb * L_in, 0:C_in] = h
            cols = []
            for b in range(Bb):                  # static unroll (tiny Bb)
                base = b * L_in
                cols.append(jnp.concatenate(
                    [s_in[base + k:base + k + L_conv, 0:C_in] for k in range(K)],
                    axis=1))
            cols = jnp.concatenate(cols, axis=0)            # (Bb*L_conv, K*C_in) f32

            off, width = next(bi)
            a = jnp.dot(cols.astype(jnp.bfloat16), next(wi)[...],
                        preferred_element_type=jnp.float32)  # one MXU dot per layer
            a = jnp.maximum(a + bias_all[:, off:off + width], 0.0)   # bias+ReLU in f32

            # MaxPool1d(2): sublane-strided even/odd reads + elementwise max (VPU)
            s_act[0:Bb * L_conv, 0:C_out] = a
            pooled = []
            for b in range(Bb):
                base = b * L_conv
                ev = s_act[pl.ds(base, L_pool, stride=2), 0:C_out]
                od = s_act[pl.ds(base + 1, L_pool, stride=2), 0:C_out]
                pooled.append(jnp.maximum(ev, od))
            h = jnp.concatenate(pooled, axis=0)             # (Bb*L_pool, C_out) f32
            # TODO(synk): train-mode Dropout after pooling is not implemented (eval = identity).

        # ---- channel-major flatten fused into fc1 (pre-permuted weight) ----
        s_in[0:Bb * L_last, 0:C_last] = h
        G = jnp.concatenate(
            [s_in[pl.ds(t, Bb, stride=L_last), 0:C_last] for t in range(L_last)],
            axis=1)                                         # (Bb, L_last*C_last) f32

        # ---- dense blocks: Linear -> ReLU (fc1 uses the permuted weight) ----
        z = G
        for _ in range(n_dense):
            off, width = next(bi)
            y = jnp.dot(z.astype(jnp.bfloat16), next(wi)[...],
                        preferred_element_type=jnp.float32) + bias_all[:, off:off + width]
            z = jnp.maximum(y, 0.0)
            # TODO(synk): train-mode Dropout between dense layers not implemented (eval = identity).

        # ---- output layer + softmax(dim=1), all in f32 ----
        off, width = next(bi)
        logits = jnp.dot(z.astype(jnp.bfloat16), next(wi)[...],
                         preferred_element_type=jnp.float32) + bias_all[:, off:off + width]
        logits = logits - jnp.max(logits, axis=1, keepdims=True)
        e = jnp.exp(logits)
        o_ref[...] = (e / jnp.sum(e, axis=1, keepdims=True)).astype(o_ref.dtype)

    return kernel


# ---------------------------------------------------------------------------
# Forward wrapper: single pallas_call, batch tiled across the grid
# ---------------------------------------------------------------------------
def cnn1d_forward(prepared, x, batch_tile=None):
    """x: (B, C_in, L) float32 — same layout as the PyTorch Conv1d input."""
    B, C0, L0 = x.shape
    Bb = B if batch_tile is None else int(batch_tile)
    if Bb <= 0 or B % Bb != 0:
        Bb = B

    conv_dims = prepared["conv_dims"]
    assert conv_dims[0][0] == L0 and conv_dims[0][1] == C0, "input shape mismatch"
    L_last, C_last = prepared["L_last"], prepared["C_last"]
    n_dense = len(prepared["fc_w"])
    num_labels = prepared["num_labels"]

    # Input in row layout (B*L, C_in), row index = b*L + t (batches contiguous).
    x_rows = jnp.transpose(x, (0, 2, 1)).reshape(B * L0, C0).astype(jnp.float32)

    # Shared scratch sizes (f32), rounded to sublane/lane multiples.
    rows_needed = [Bb * d[0] for d in conv_dims] + [Bb * d[2] for d in conv_dims] + [Bb * L_last]
    cols_needed = [d[1] for d in conv_dims] + [d[4] for d in conv_dims] + [C_last]
    s_rows = int(-(-max(rows_needed) // 8) * 8)
    s_cols = int(-(-max(cols_needed) // 128) * 128)

    kernel = _make_kernel(Bb, conv_dims, L_last, C_last, n_dense, prepared["bias_slices"])

    weights = list(prepared["conv_w"]) + list(prepared["fc_w"]) + [prepared["out_w"]]
    operands = [x_rows, prepared["bias"]] + weights

    rep2 = lambda i: (0, 0)                          # weights/bias replicated over batch grid
    in_specs = [pl.BlockSpec((Bb * L0, C0), lambda i: (i, 0)),
                pl.BlockSpec(tuple(prepared["bias"].shape), rep2)]
    in_specs += [pl.BlockSpec(tuple(w.shape), rep2) for w in weights]

    return pl.pallas_call(
        kernel,
        out_shape=jax.ShapeDtypeStruct((B, num_labels), jnp.float32),
        grid=(B // Bb,),
        in_specs=in_specs,
        out_specs=pl.BlockSpec((Bb, num_labels), lambda i: (i, 0)),
        scratch_shapes=[pltpu.VMEM((s_rows, s_cols), jnp.float32),
                        pltpu.VMEM((s_rows, s_cols), jnp.float32)],
        compiler_params=pltpu.CompilerParams(dimension_semantics=("parallel",)),
    )(*operands)


# ---------------------------------------------------------------------------
# Pure-JAX f32 reference (same math as the PyTorch module, eval mode)
# ---------------------------------------------------------------------------
def cnn1d_reference(params, x):
    h = x  # (B, C, L)
    for (w, b) in params["conv"]:
        K = w.shape[0]
        B, _, L_in = h.shape
        C_out = w.shape[2]
        L_conv = L_in - K + 1
        acc = jnp.zeros((B, C_out, L_conv), jnp.float32)
        for k in range(K):
            acc = acc + jnp.einsum('io,bil->bol', w[k], h[:, :, k:k + L_conv])
        acc = jnp.maximum(acc + b.reshape(1, -1, 1), 0.0)
        L_pool = L_conv // MAX_POOL
        h = acc[:, :, :L_pool * MAX_POOL].reshape(B, C_out, L_pool, MAX_POOL).max(axis=3)
    h = h.reshape(h.shape[0], -1)          # channel-major flatten, like torch.flatten
    for (w, b) in params["dense"]:
        h = jnp.maximum(h @ w + b, 0.0)
    w, b = params["out"]
    return jax.nn.softmax(h @ w + b, axis=1)


if __name__ == "__main__":
    # Small, module-consistent config.
    input_shape = (16, 4)          # (seq_len, channels)
    n_conv_layers = 2
    first_conv_layer_size = 8
    num_dense_layers = 2
    first_dense_layer_size = 32
    num_labels = 5
    batch = 2

    key = jax.random.PRNGKey(0)
    key, kx, kp = jax.random.split(key, 3)
    x = jax.random.normal(kx, (batch, input_shape[1], input_shape[0]), jnp.float32)  # (B, C, L)
    params = init_params(kp, input_shape, n_conv_layers, first_conv_layer_size,
                         num_dense_layers, first_dense_layer_size, num_labels)

    prepared = prepare_params(params, input_shape)                   # one-time host prep
    forward = jax.jit(functools.partial(cnn1d_forward, prepared))    # compiled once, reused

    out = jax.block_until_ready(forward(x))
    out2 = jax.block_until_ready(forward(x))   # second call: no host prep, no re-upload

    assert out.shape == (batch, num_labels)
    assert np.allclose(np.asarray(jnp.sum(out, axis=1)), 1.0, atol=1e-5)
    # Loose tolerance covers bf16 weights / bf16 matmul inputs vs the f32 reference.
    ref = np.asarray(cnn1d_reference(params, x))
    assert np.allclose(np.asarray(out), ref, atol=5e-2), "mismatch vs pure-JAX reference"
    assert np.allclose(np.asarray(out2), np.asarray(out))
    print("KERNEL_OK")
</pallas_src>

<mosaic_0001>
module attributes {stable_mosaic.version = 11 : i64} {
  func.func @kernel(%arg0: i32, %arg1: memref<32x4xf32, #tpu.memory_space<vmem>>, %arg2: memref<1x69xf32, #tpu.memory_space<vmem>>, %arg3: memref<12x8xbf16, #tpu.memory_space<vmem>>, %arg4: memref<24x16xbf16, #tpu.memory_space<vmem>>, %arg5: memref<32x32xbf16, #tpu.memory_space<vmem>>, %arg6: memref<32x8xbf16, #tpu.memory_space<vmem>>, %arg7: memref<8x5xbf16, #tpu.memory_space<vmem>>, %arg8: memref<2x5xf32, #tpu.memory_space<vmem>>, %arg9: memref<32x128xf32, #tpu.memory_space<vmem>>, %arg10: memref<32x128xf32, #tpu.memory_space<vmem>>) attributes {dimension_semantics = [#tpu.dimension_semantics<parallel>], iteration_bounds = array<i64: 1>, scalar_prefetch = 0 : i64, scratch_operands = 2 : i64, tpu.core_type = #tpu.core_type<tc>, window_params = [{transform_indices = @transform_0, window_bounds = array<i64: 32, 4>}, {pipeline_mode = #tpu.pipeline_mode<synchronous>, transform_indices = @transform_1, window_bounds = array<i64: 1, 69>}, {pipeline_mode = #tpu.pipeline_mode<synchronous>, transform_indices = @transform_2, window_bounds = array<i64: 12, 8>}, {pipeline_mode = #tpu.pipeline_mode<synchronous>, transform_indices = @transform_3, window_bounds = array<i64: 24, 16>}, {pipeline_mode = #tpu.pipeline_mode<synchronous>, transform_indices = @transform_4, window_bounds = array<i64: 32, 32>}, {pipeline_mode = #tpu.pipeline_mode<synchronous>, transform_indices = @transform_5, window_bounds = array<i64: 32, 8>}, {pipeline_mode = #tpu.pipeline_mode<synchronous>, transform_indices = @transform_6, window_bounds = array<i64: 8, 5>}, {transform_indices = @transform_7, window_bounds = array<i64: 2, 5>}]} {
    %c0 = arith.constant 0 : index
    %c0_0 = arith.constant 0 : index
    %0 = vector.load %arg2[%c0, %c0_0] : memref<1x69xf32, #tpu.memory_space<vmem>>, vector<1x69xf32>
    %c0_1 = arith.constant 0 : index
    %c0_2 = arith.constant 0 : index
    %1 = vector.load %arg1[%c0_1, %c0_2] : memref<32x4xf32, #tpu.memory_space<vmem>>, vector<32x4xf32>
    %c0_3 = arith.constant 0 : index
    %c0_4 = arith.constant 0 : index
    %2 = vector.load %arg9[%c0_3, %c0_4] : memref<32x128xf32, #tpu.memory_space<vmem>>, vector<32x4xf32>
    tpu.vector_store %arg9[%c0_3, %c0_4], %1 {strides = array<i32>} : memref<32x128xf32, #tpu.memory_space<vmem>>, vector<32x4xf32>,
    %c0_5 = arith.constant 0 : index
    %c0_6 = arith.constant 0 : index
    %3 = vector.load %arg9[%c0_5, %c0_6] : memref<32x128xf32, #tpu.memory_space<vmem>>, vector<14x4xf32>
    %c1 = arith.constant 1 : index
    %c0_7 = arith.constant 0 : index
    %4 = vector.load %arg9[%c1, %c0_7] : memref<32x128xf32, #tpu.memory_space<vmem>>, vector<14x4xf32>
    %c2 = arith.constant 2 : index
    %c0_8 = arith.constant 0 : index
    %5 = vector.load %arg9[%c2, %c0_8] : memref<32x128xf32, #tpu.memory_space<vmem>>, vector<14x4xf32>
    %6 = tpu.concatenate %3, %4, %5 in 1 : vector<14x4xf32>, vector<14x4xf32>, vector<14x4xf32> -> vector<14x12xf32>
    %c16 = arith.constant 16 : index
    %c0_9 = arith.constant 0 : index
    %7 = vector.load %arg9[%c16, %c0_9] : memref<32x128xf32, #tpu.memory_space<vmem>>, vector<14x4xf32>
    %c17 = arith.constant 17 : index
    %c0_10 = arith.constant 0 : index
    %8 = vector.load %arg9[%c17, %c0_10] : memref<32x128xf32, #tpu.memory_space<vmem>>, vector<14x4xf32>
    %c18 = arith.constant 18 : index
    %c0_11 = arith.constant 0 : index
    %9 = vector.load %arg9[%c18, %c0_11] : memref<32x128xf32, #tpu.memory_space<vmem>>, vector<14x4xf32>
    %10 = tpu.concatenate %7, %8, %9 in 1 : vector<14x4xf32>, vector<14x4xf32>, vector<14x4xf32> -> vector<14x12xf32>
    %11 = tpu.concatenate %6, %10 in 0 : vector<14x12xf32>, vector<14x12xf32> -> vector<28x12xf32>
    %12 = arith.truncf %11 : vector<28x12xf32> to vector<28x12xbf16>
    %c0_12 = arith.constant 0 : index
    %c0_13 = arith.constant 0 : index
    %13 = vector.load %arg3[%c0_12, %c0_13] : memref<12x8xbf16, #tpu.memory_space<vmem>>, vector<12x8xbf16>
    %cst = arith.constant dense<0.000000e+00> : vector<28x8xf32>
    %14 = tpu.matmul %12, %13, %cst {dimension_numbers = #tpu.dot_dimension_numbers<[1], [0], [0], [1], [0, 0, 1, 1], [], []>} : vector<28x12xbf16>, vector<12x8xbf16>, vector<28x8xf32> -> vector<28x8xf32>
    %15 = vector.extract_strided_slice %0 {offsets = [0, 0], sizes = [1, 8], strides = [1, 1]} : vector<1x69xf32> to vector<1x8xf32>
    %16 = vector.broadcast %15 : vector<1x8xf32> to vector<28x8xf32>
    %17 = arith.addf %14, %16 : vector<28x8xf32>
    %cst_14 = arith.constant 0.000000e+00 : f32
    %18 = vector.broadcast %cst_14 : f32 to vector<28x8xf32>
    %19 = arith.maximumf %17, %18 : vector<28x8xf32>
    %c0_15 = arith.constant 0 : index
    %c0_16 = arith.constant 0 : index
    %20 = vector.load %arg10[%c0_15, %c0_16] : memref<32x128xf32, #tpu.memory_space<vmem>>, vector<28x8xf32>
    tpu.vector_store %arg10[%c0_15, %c0_16], %19 {strides = array<i32>} : memref<32x128xf32, #tpu.memory_space<vmem>>, vector<28x8xf32>,
    %c0_17 = arith.constant 0 : index
    %c0_18 = arith.constant 0 : index
    %21 = tpu.strided_load %arg10[%c0_17, %c0_18] {strides = array<i32: 2, 1>} : memref<32x128xf32, #tpu.memory_space<vmem>>, vector<7x8xf32>
    %c1_19 = arith.constant 1 : index
    %c0_20 = arith.constant 0 : index
    %22 = tpu.strided_load %arg10[%c1_19, %c0_20] {strides = array<i32: 2, 1>} : memref<32x128xf32, #tpu.memory_space<vmem>>, vector<7x8xf32>
    %23 = arith.maximumf %21, %22 : vector<7x8xf32>
    %c14 = arith.constant 14 : index
    %c0_21 = arith.constant 0 : index
    %24 = tpu.strided_load %arg10[%c14, %c0_21] {strides = array<i32: 2, 1>} : memref<32x128xf32, #tpu.memory_space<vmem>>, vector<7x8xf32>
    %c15 = arith.constant 15 : index
    %c0_22 = arith.constant 0 : index
    %25 = tpu.strided_load %arg10[%c15, %c0_22] {strides = array<i32: 2, 1>} : memref<32x128xf32, #tpu.memory_space<vmem>>, vector<7x8xf32>
    %26 = arith.maximumf %24, %25 : vector<7x8xf32>
    %27 = tpu.concatenate %23, %26 in 0 : vector<7x8xf32>, vector<7x8xf32> -> vector<14x8xf32>
    %c0_23 = arith.constant 0 : index
    %c0_24 = arith.constant 0 : index
    %28 = vector.load %arg9[%c0_23, %c0_24] : memref<32x128xf32, #tpu.memory_space<vmem>>, vector<14x8xf32>
    tpu.vector_store %arg9[%c0_23, %c0_24], %27 {strides = array<i32>} : memref<32x128xf32, #tpu.memory_space<vmem>>, vector<14x8xf32>,
    %c0_25 = arith.constant 0 : index
    %c0_26 = arith.constant 0 : index
    %29 = vector.load %arg9[%c0_25, %c0_26] : memref<32x128xf32, #tpu.memory_space<vmem>>, vector<5x8xf32>
    %c1_27 = arith.constant 1 : index
    %c0_28 = arith.constant 0 : index
    %30 = vector.load %arg9[%c1_27, %c0_28] : memref<32x128xf32, #tpu.memory_space<vmem>>, vector<5x8xf32>
    %c2_29 = arith.constant 2 : index
    %c0_30 = arith.constant 0 : index
    %31 = vector.load %arg9[%c2_29, %c0_30] : memref<32x128xf32, #tpu.memory_space<vmem>>, vector<5x8xf32>
    %32 = tpu.concatenate %29, %30, %31 in 1 : vector<5x8xf32>, vector<5x8xf32>, vector<5x8xf32> -> vector<5x24xf32>
    %c7 = arith.constant 7 : index
    %c0_31 = arith.constant 0 : index
    %33 = vector.load %arg9[%c7, %c0_31] : memref<32x128xf32, #tpu.memory_space<vmem>>, vector<5x8xf32>
    %c8 = arith.constant 8 : index
    %c0_32 = arith.constant 0 : index
    %34 = vector.load %arg9[%c8, %c0_32] : memref<32x128xf32, #tpu.memory_space<vmem>>, vector<5x8xf32>
    %c9 = arith.constant 9 : index
    %c0_33 = arith.constant 0 : index
    %35 = vector.load %arg9[%c9, %c0_33] : memref<32x128xf32, #tpu.memory_space<vmem>>, vector<5x8xf32>
    %36 = tpu.concatenate %33, %34, %35 in 1 : vector<5x8xf32>, vector<5x8xf32>, vector<5x8xf32> -> vector<5x24xf32>
    %37 = tpu.concatenate %32, %36 in 0 : vector<5x24xf32>, vector<5x24xf32> -> vector<10x24xf32>
    %38 = arith.truncf %37 : vector<10x24xf32> to vector<10x24xbf16>
    %c0_34 = arith.constant 0 : index
    %c0_35 = arith.constant 0 : index
    %39 = vector.load %arg4[%c0_34, %c0_35] : memref<24x16xbf16, #tpu.memory_space<vmem>>, vector<24x16xbf16>
    %cst_36 = arith.constant dense<0.000000e+00> : vector<10x16xf32>
    %40 = tpu.matmul %38, %39, %cst_36 {dimension_numbers = #tpu.dot_dimension_numbers<[1], [0], [0], [1], [0, 0, 1, 1], [], []>} : vector<10x24xbf16>, vector<24x16xbf16>, vector<10x16xf32> -> vector<10x16xf32>
    %41 = vector.extract_strided_slice %0 {offsets = [0, 8], sizes = [1, 16], strides = [1, 1]} : vector<1x69xf32> to vector<1x16xf32>
    %42 = vector.broadcast %41 : vector<1x16xf32> to vector<10x16xf32>
    %43 = arith.addf %40, %42 : vector<10x16xf32>
    %cst_37 = arith.constant 0.000000e+00 : f32
    %44 = vector.broadcast %cst_37 : f32 to vector<10x16xf32>
    %45 = arith.maximumf %43, %44 : vector<10x16xf32>
    %c0_38 = arith.constant 0 : index
    %c0_39 = arith.constant 0 : index
    %46 = vector.load %arg10[%c0_38, %c0_39] : memref<32x128xf32, #tpu.memory_space<vmem>>, vector<10x16xf32>
    tpu.vector_store %arg10[%c0_38, %c0_39], %45 {strides = array<i32>} : memref<32x128xf32, #tpu.memory_space<vmem>>, vector<10x16xf32>,
    %c0_40 = arith.constant 0 : index
    %c0_41 = arith.constant 0 : index
    %47 = tpu.strided_load %arg10[%c0_40, %c0_41] {strides = array<i32: 2, 1>} : memref<32x128xf32, #tpu.memory_space<vmem>>, vector<2x16xf32>
    %c1_42 = arith.constant 1 : index
    %c0_43 = arith.constant 0 : index
    %48 = tpu.strided_load %arg10[%c1_42, %c0_43] {strides = array<i32: 2, 1>} : memref<32x128xf32, #tpu.memory_space<vmem>>, vector<2x16xf32>
    %49 = arith.maximumf %47, %48 : vector<2x16xf32>
    %c5 = arith.constant 5 : index
    %c0_44 = arith.constant 0 : index
    %50 = tpu.strided_load %arg10[%c5, %c0_44] {strides = array<i32: 2, 1>} : memref<32x128xf32, #tpu.memory_space<vmem>>, vector<2x16xf32>
    %c6 = arith.constant 6 : index
    %c0_45 = arith.constant 0 : index
    %51 = tpu.strided_load %arg10[%c6, %c0_45] {strides = array<i32: 2, 1>} : memref<32x128xf32, #tpu.memory_space<vmem>>, vector<2x16xf32>
    %52 = arith.maximumf %50, %51 : vector<2x16xf32>
    %53 = tpu.concatenate %49, %52 in 0 : vector<2x16xf32>, vector<2x16xf32> -> vector<4x16xf32>
    %c0_46 = arith.constant 0 : index
    %c0_47 = arith.constant 0 : index
    %54 = vector.load %arg9[%c0_46, %c0_47] : memref<32x128xf32, #tpu.memory_space<vmem>>, vector<4x16xf32>
    tpu.vector_store %arg9[%c0_46, %c0_47], %53 {strides = array<i32>} : memref<32x128xf32, #tpu.memory_space<vmem>>, vector<4x16xf32>,
    %c0_48 = arith.constant 0 : index
    %c0_49 = arith.constant 0 : index
    %55 = tpu.strided_load %arg9[%c0_48, %c0_49] {strides = array<i32: 2, 1>} : memref<32x128xf32, #tpu.memory_space<vmem>>, vector<2x16xf32>
    %c1_50 = arith.constant 1 : index
    %c0_51 = arith.constant 0 : index
    %56 = tpu.strided_load %arg9[%c1_50, %c0_51] {strides = array<i32: 2, 1>} : memref<32x128xf32, #tpu.memory_space<vmem>>, vector<2x16xf32>
    %57 = tpu.concatenate %55, %56 in 1 : vector<2x16xf32>, vector<2x16xf32> -> vector<2x32xf32>
    %58 = arith.truncf %57 : vector<2x32xf32> to vector<2x32xbf16>
    %c0_52 = arith.constant 0 : index
    %c0_53 = arith.constant 0 : index
    %59 = vector.load %arg5[%c0_52, %c0_53] : memref<32x32xbf16, #tpu.memory_space<vmem>>, vector<32x32xbf16>
    %cst_54 = arith.constant dense<0.000000e+00> : vector<2x32xf32>
    %60 = tpu.matmul %58, %59, %cst_54 {dimension_numbers = #tpu.dot_dimension_numbers<[1], [0], [0], [1], [0, 0, 1, 1], [], []>} : vector<2x32xbf16>, vector<32x32xbf16>, vector<2x32xf32> -> vector<2x32xf32>
    %61 = vector.extract_strided_slice %0 {offsets = [0, 24], sizes = [1, 32], strides = [1, 1]} : vector<1x69xf32> to vector<1x32xf32>
    %62 = vector.broadcast %61 : vector<1x32xf32> to vector<2x32xf32>
    %63 = arith.addf %60, %62 : vector<2x32xf32>
    %cst_55 = arith.constant 0.000000e+00 : f32
    %64 = vector.broadcast %cst_55 : f32 to vector<2x32xf32>
    %65 = arith.maximumf %63, %64 : vector<2x32xf32>
    %66 = arith.truncf %65 : vector<2x32xf32> to vector<2x32xbf16>
    %c0_56 = arith.constant 0 : index
    %c0_57 = arith.constant 0 : index
    %67 = vector.load %arg6[%c0_56, %c0_57] : memref<32x8xbf16, #tpu.memory_space<vmem>>, vector<32x8xbf16>
    %cst_58 = arith.constant dense<0.000000e+00> : vector<2x8xf32>
    %68 = tpu.matmul %66, %67, %cst_58 {dimension_numbers = #tpu.dot_dimension_numbers<[1], [0], [0], [1], [0, 0, 1, 1], [], []>} : vector<2x32xbf16>, vector<32x8xbf16>, vector<2x8xf32> -> vector<2x8xf32>
    %69 = vector.extract_strided_slice %0 {offsets = [0, 56], sizes = [1, 8], strides = [1, 1]} : vector<1x69xf32> to vector<1x8xf32>
    %70 = vector.broadcast %69 : vector<1x8xf32> to vector<2x8xf32>
    %71 = arith.addf %68, %70 : vector<2x8xf32>
    %cst_59 = arith.constant 0.000000e+00 : f32
    %72 = vector.broadcast %cst_59 : f32 to vector<2x8xf32>
    %73 = arith.maximumf %71, %72 : vector<2x8xf32>
    %74 = arith.truncf %73 : vector<2x8xf32> to vector<2x8xbf16>
    %c0_60 = arith.constant 0 : index
    %c0_61 = arith.constant 0 : index
    %75 = vector.load %arg7[%c0_60, %c0_61] : memref<8x5xbf16, #tpu.memory_space<vmem>>, vector<8x5xbf16>
    %cst_62 = arith.constant dense<0.000000e+00> : vector<2x5xf32>
    %76 = tpu.matmul %74, %75, %cst_62 {dimension_numbers = #tpu.dot_dimension_numbers<[1], [0], [0], [1], [0, 0, 1, 1], [], []>} : vector<2x8xbf16>, vector<8x5xbf16>, vector<2x5xf32> -> vector<2x5xf32>
    %77 = vector.extract_strided_slice %0 {offsets = [0, 64], sizes = [1, 5], strides = [1, 1]} : vector<1x69xf32> to vector<1x5xf32>
    %78 = vector.broadcast %77 : vector<1x5xf32> to vector<2x5xf32>
    %79 = arith.addf %76, %78 : vector<2x5xf32>
    %cst_63 = arith.constant dense<0xFF800000> : vector<2xf32>
    %80 = vector.multi_reduction <maximumf>, %79, %cst_63 [1] : vector<2x5xf32> to vector<2xf32>
    %81 = vector.shape_cast %80 : vector<2xf32> to vector<2x1xf32>
    %82 = vector.broadcast %81 : vector<2x1xf32> to vector<2x5xf32>
    %83 = arith.subf %79, %82 : vector<2x5xf32>
    %84 = math.exp %83 : vector<2x5xf32>
    %cst_64 = arith.constant dense<0.000000e+00> : vector<2xf32>
    %85 = vector.multi_reduction <add>, %84, %cst_64 [1] : vector<2x5xf32> to vector<2xf32>
    %86 = vector.shape_cast %85 : vector<2xf32> to vector<2x1xf32>
    %87 = vector.broadcast %86 : vector<2x1xf32> to vector<2x5xf32>
    %88 = arith.divf %84, %87 : vector<2x5xf32>
    %c0_65 = arith.constant 0 : index
    %c0_66 = arith.constant 0 : index
    %89 = vector.load %arg8[%c0_65, %c0_66] : memref<2x5xf32, #tpu.memory_space<vmem>>, vector<2x5xf32>
    tpu.vector_store %arg8[%c0_65, %c0_66], %88 {strides = array<i32>} : memref<2x5xf32, #tpu.memory_space<vmem>>, vector<2x5xf32>,
    return
  }
  func.func @transform_0(%arg0: i32) -> (i32, i32) {
    %c0_i32 = arith.constant 0 : i32
    %c0_i32_0 = arith.constant 0 : i32
    return %arg0, %c0_i32 : i32, i32
  }
  func.func @transform_1(%arg0: i32) -> (i32, i32) {
    %c0_i32 = arith.constant 0 : i32
    %c0_i32_0 = arith.constant 0 : i32
    %c0_i32_1 = arith.constant 0 : i32
    return %c0_i32, %c0_i32_0 : i32, i32
  }
  func.func @transform_2(%arg0: i32) -> (i32, i32) {
    %c0_i32 = arith.constant 0 : i32
    %c0_i32_0 = arith.constant 0 : i32
    %c0_i32_1 = arith.constant 0 : i32
    return %c0_i32, %c0_i32_0 : i32, i32
  }
  func.func @transform_3(%arg0: i32) -> (i32, i32) {
    %c0_i32 = arith.constant 0 : i32
    %c0_i32_0 = arith.constant 0 : i32
    %c0_i32_1 = arith.constant 0 : i32
    return %c0_i32, %c0_i32_0 : i32, i32
  }
  func.func @transform_4(%arg0: i32) -> (i32, i32) {
    %c0_i32 = arith.constant 0 : i32
    %c0_i32_0 = arith.constant 0 : i32
    %c0_i32_1 = arith.constant 0 : i32
    return %c0_i32, %c0_i32_0 : i32, i32
  }
  func.func @transform_5(%arg0: i32) -> (i32, i32) {
    %c0_i32 = arith.constant 0 : i32
    %c0_i32_0 = arith.constant 0 : i32
    %c0_i32_1 = arith.constant 0 : i32
    return %c0_i32, %c0_i32_0 : i32, i32
  }
  func.func @transform_6(%arg0: i32) -> (i32, i32) {
    %c0_i32 = arith.constant 0 : i32
    %c0_i32_0 = arith.constant 0 : i32
    %c0_i32_1 = arith.constant 0 : i32
    return %c0_i32, %c0_i32_0 : i32, i32
  }
  func.func @transform_7(%arg0: i32) -> (i32, i32) {
    %c0_i32 = arith.constant 0 : i32
    %c0_i32_0 = arith.constant 0 : i32
    return %arg0, %c0_i32 : i32, i32
  }
}

</mosaic_0001>

<bundles_post_ra>
// kernel: cnn1d_forward.1
= control target key start
LH: loop header
LB: loop body
LE: loop exit
PB: predicated region body
PF: predicated region fallthrough
CT: control target
= control target key end

     0   :  { %vm33_vm0 = vcmask 31744   ;;  %vm93_vm1 = vcmask 1045504   ;;  %s834_s0 = inlined_call_operand.vmem [shape: f32[32,4], index: 0, kind: input, shape index: {}]   ;;  %s835_s1 = inlined_call_operand.vmem [shape: f32[1,69], index: 1, kind: input, shape index: {}]   ;;  %s836_s2 = inlined_call_operand.vmem [shape: bf16[12,8], index: 2, kind: input, shape index: {}]   ;;  %s837_s3 = inlined_call_operand.vmem [shape: bf16[24,16], index: 3, kind: input, shape index: {}]   ;;  %s838_s4 = inlined_call_operand.vmem [shape: bf16[32,32], index: 4, kind: input, shape index: {}]   ;;  %s839_s5 = inlined_call_operand.vmem [shape: bf16[32,8], index: 5, kind: input, shape index: {}]   ;;  %s840_s6 = inlined_call_operand.vmem [shape: bf16[8,5], index: 6, kind: input, shape index: {}]   ;;  %s841_s7 = inlined_call_operand.hbm [shape: f32[2,5], index: 7, kind: output, shape index: {}]  }
   0x1   :  { %v31_v0 = vld [vmem:[%s834_s0 + $0x10] sm:$0xff]  ;;  %v32_v1 = vld [vmem:[%s834_s0 + $0x18] sm:$0xff]  ;;  %v29_v2 = vld [vmem:[%s834_s0] sm:$0xff] }
   0x2   :  { %36 = vst.msk [vmem:[#allocation2 + $0x10] sm:$0xff] %vm33_vm0, %v31_v0  ;;  %37 = vst.msk [vmem:[#allocation2 + $0x18] sm:$0xff] %vm33_vm0, %v32_v1  ;;  %v30_v3 = vld [vmem:[%s834_s0 + $0x8] sm:$0xff]  ;;  %v633_v4 = vld [vmem:[%s836_s2] sm:$0x3f]  }
   0x3   :  { %34 = vst.msk [vmem:[#allocation2] sm:$0xff] %vm33_vm0, %v29_v2  ;;  %35 = vst.msk [vmem:[#allocation2 + $0x8] sm:$0xff] %vm33_vm0, %v30_v3 }
   0x4   :  { %12 = vsyncpa [#allocation5], 0  ;;  %597 = vmatprep.subr.msk.bf16.mxu0 %vm93_vm1, %v633_v4  ;;  %v124_v8 = vsel %vm93_vm1, %v633_v4, 0  ;;  %s668_s0 = smov 4   ;;  %s669_s2 = smov 8   ;;  %vm62_vm2 = vcmask 64512  }
   0x5   :  { %562 = vmatpush3.bf16.msra.mxu0 %v124_v8  ;;  %vm116_vm3 = vcmask 97280   ;;  %v754_v48 = vld [vmem:[%s835_s1] ss:$0 sm:$0xff]  ;;  %vm182_vm4 = vcmask 60416   ;;  %vm196_vm5 = vcmask 1046528   ;;  %vm199_vm6 = vcmask 62464  }
   0x6   :  { %v634_v4 = vld [vmem:[%s837_s3] sm:$0xff]   ;;  %vm253_vm7 = vcmask 1043456   ;;  %vm671_vm8 = vmmov 0   ;;  %s672_s16 = smov 16   ;;  %vm213_vm9 = vcmask 130048   ;;  %vm231_vm10 = vcmask 1044480  }
   0x7   :  { %vm249_vm11 = vcmask 195584   ;;  %vm301_vm12 = vcmask 123904   ;;  %vm314_vm13 = vcmask 1041408   ;;  %vm316_vm14 = vcmask 125952   ;;  %s674_s22 = smov 104   ;;  %s675_s27 = smov 72  }
   0x8   :  { %vm346_vm15 = vcmask 261120  }
   0x9   :  { %v67_v5 = vld [vmem:[#allocation2 + $0x11] sm:$0xff]  ;;  %v68_v6 = vld [vmem:[#allocation2 + $0x19] sm:$0x3f] }
   0xa   :  { %v69_v7 = vld [vmem:[#allocation2 + $0x12] sm:$0xff]  ;;  %v608_v9 = vpack.i.bf16 %v68_v6, %v67_v5  ;;  %v40_v10 = vld [vmem:[#allocation2 + $0x1] sm:$0xff]  ;;  %v41_v11 = vld [vmem:[#allocation2 + $0x9] sm:$0x3f]  ;;  %v670_v5 = vmov 0.0  }
   0xb   :  { %v70_v12 = vld [vmem:[#allocation2 + $0x1a] sm:$0x3f]  ;;  %v618_v13 = vpack.i.bf16 %v40_v10, %v41_v11  ;;  %v42_v14 = vld [vmem:[#allocation2 + $0x2] sm:$0xff]  ;;  %v43_v15 = vld [vmem:[#allocation2 + $0xa] sm:$0x3f]  ;;  %567 = vmatprep.subr.bf16.mxu1 %v670_v5  ;;  %575 = vmatprep.subr.bf16.mxu0 %v670_v5 }
   0xc   :  { %609 = vrot.lane.b32.xlu0 %v608_v9, %s668_s0  ;;  %v613_v16 = vpack.i.bf16 %v70_v12, %v69_v7  ;;  %v623_v17 = vpack.i.bf16 %v42_v14, %v43_v15  ;;  %v66_v21 = vld [vmem:[#allocation2 + $0x18] sm:$0x3f]  ;;  %v65_v24 = vld [vmem:[#allocation2 + $0x10] sm:$0xff]  ;;  %v39_v25 = vld [vmem:[#allocation2 + $0x8] sm:$0x3f]  ;;  %568 = vmatpush3.bf16.msra.mxu1 %v634_v4 }
   0xd   :  { %619 = vrot.lane.b32.xlu1 %v618_v13, %s668_s0  ;;  %v38_v28 = vld [vmem:[#allocation2] sm:$0xff]  ;;  %569 = vmatprep.subr.bf16.mxu1 %v670_v5  ;;  %v635_v7 = vld [vmem:[%s837_s3 + $0x8] ss:$0 sps:$4 sm:$0xff]   ;;  %s673_s3 = smov 120  }
   0xe   :  { %v255_v8 = vsel %vm253_vm7, %v635_v7, 0  ;;  %571 = vmatprep.mubr.msk.bf16.mxu1 %vm671_vm8, %v670_v5 }
  0x10   :  { %614 = vrot.lane.b32.xlu0 %v613_v16, %s669_s2  ;;  %570 = vmatpush3.bf16.msra.mxu1 %v255_v8 }
  0x11   :  { %624 = vrot.lane.b32.xlu1 %v623_v17, %s669_s2  ;;  %583 = vmatprep.subr.bf16.mxu1 %v670_v5 }
  0x7e   :  { %v610_v18 = vpop.permute.xlu0 %609 }
  0x7f   :  { %v612_v19 = vunpack.i.h.bf16 %v610_v18  ;;  %v620_v20 = vpop.permute.xlu1 %619  ;;  %v611_v22 = vunpack.i.l.bf16 %v610_v18 }
  0x80   :  { %v621_v23 = vunpack.i.l.bf16 %v620_v20  ;;  %v622_v26 = vunpack.i.h.bf16 %v620_v20 }
  0x81   :  { %v88_v29 = vsel %vm33_vm0, %v66_v21, %v612_v19  ;;  %v87_v33 = vsel %vm33_vm0, %v65_v24, %v611_v22 }
  0x82   :  { %v615_v27 = vpop.permute.xlu0 %614  ;;  %v61_v34 = vsel %vm33_vm0, %v39_v25, %v621_v23  ;;  %v60_v39 = vsel %vm33_vm0, %v38_v28, %v622_v26  ;;  %v636_v28 = vld [vmem:[%s838_s4] sm:$0xff]   ;;  %vm506_vm0 = vcmask 33792  }
  0x83   :  { %v617_v30 = vunpack.i.h.bf16 %v615_v27  ;;  %v616_v31 = vunpack.i.l.bf16 %v615_v27  ;;  %v625_v32 = vpop.permute.xlu1 %624 }
  0x84   :  { %v627_v35 = vunpack.i.h.bf16 %v625_v32  ;;  %v626_v36 = vunpack.i.l.bf16 %v625_v32 }
  0x85   :  { %v89_v37 = vsel %vm62_vm2, %v87_v33, %v616_v31  ;;  %v90_v38 = vsel %vm62_vm2, %v88_v29, %v617_v30  ;;  %v637_v29 = vld [vmem:[%s838_s4 + $0x8] sm:$0xff]  }
  0x86   :  { %v94_v40 = vrot.slane %v89_v37, 2  ;;  %v95_v41 = vrot.slane %v90_v38, 2  ;;  %v64_v42 = vsel %vm62_vm2, %v61_v34, %v626_v36  ;;  %v63_v44 = vsel %vm62_vm2, %v60_v39, %v627_v35 }
  0x88   :  { %v96_v43 = vsel %vm93_vm1, %v94_v40, %v95_v41  ;;  %v100_v45 = vsel %vm93_vm1, %v64_v42, %v94_v40 }
  0x89   :  { %v101_v46 = vpack.c.bf16 %v100_v45, %v63_v44  ;;  %v102_v47 = vpack.c.bf16 %v95_v41, %v96_v43 }
  0x8b   :  { %563 = vmatprep.mubr.msk.bf16.mxu0 %vm116_vm3, %v101_v46  ;;  %v638_v46 = vld [vmem:[%s839_s5] sm:$0xff]  }
  0x8c   :  { %564 = vmatmul.mubr.msk.bf16.vlgmr.msra.gmra.mrb[0].mxu0 %vm116_vm3, %v102_v47 }
  0x8d   :  { %579 = vmatprep.mubr.msk.bf16.mxu0 %vm671_vm8, %v670_v5  ;;  %576 = vmatpush3.bf16.msra.mxu0 %v636_v28 }
  0x8e   :  { %577 = vmatprep.subr.bf16.mxu0 %v670_v5 }
  0x91   :  { %578 = vmatpush3.bf16.msra.mxu0 %v637_v29 }
  0x92   :  { %591 = vmatprep.subr.bf16.mxu0 %v670_v5 }
 0x15f   :  { %v565_v49 = vpop.f32.mrb[0].mxu0 }
 0x160   :  { %v169_v50 = vadd.f32 %v565_v49, %v754_v48  ;;  %v160_v51 = vpop.f32.mrb[1].mxu0 }
 0x161   :  { %v161_v52 = vadd.f32 %v754_v48, %v160_v51  ;;  %v566_v53 = vpop.f32.mrb[2].mxu0 }
 0x162   :  { %v177_v54 = vmax.f32 %v169_v50, 0.0  ;;  %v172_v55 = vadd.f32 %v566_v53, %v754_v48  ;;  %v163_v56 = vpop.f32.mrb[3].mxu0 }
 0x163   :  { %v175_v57 = vmax.f32 %v161_v52, 0.0  ;;  %v164_v58 = vadd.f32 %v754_v48, %v163_v56 }
 0x164   :  { %181 = vst.msk [vmem:[#allocation3 + $0x10] sm:$0xff] %vm62_vm2, %v177_v54  ;;  %v178_v59 = vmax.f32 %v172_v55, 0.0  ;;  %v639_v54 = vld [vmem:[%s839_s5 + $0x8] sm:$0xff]   ;;  %v456_v55 = vld [vmem:[%s840_s6] sm:$0xf]  ;;  %s676_s5 = smov 64  }
 0x165   :  { %179 = vst.msk [vmem:[#allocation3] sm:$0xff] %vm62_vm2, %v175_v57  ;;  %v176_v60 = vmax.f32 %v164_v58, 0.0  ;;  %v464_v56 = vsel %vm253_vm7, %v456_v55, 0  ;;  %s677_s6 = smov [#allocation4]  }
 0x166   :  { %183 = vst.msk [vmem:[#allocation3 + $0x18] sm:$0xf] %vm182_vm4, %v178_v59  ;;  %s525_s28 = sshll.u32 %s677_s6, 4  ;;  %s526_s28 = int_to_ptr.vmem [resolvable:$true] %s525_s28 }
 0x167   :  { %180 = vst.msk [vmem:[#allocation3 + $0x8] sm:$0xff] %vm62_vm2, %v176_v60  ;;  %s644_s29 = scalar_lea.vmem %s526_s28, 32  ;;  %p649_p1 = scmp.lt.s32.totalorder %s526_s28, %s526_s28 }
 0x168   :  { %p645_p0 = scmp.ne.s32.totalorder %s526_s28, %s644_s29  ;;  %p650_p2 = scmp.lt.s32.totalorder %s644_s29, %s644_s29 }
 0x16a   :  { %p651_p3 = por %p650_p2, %p649_p1 }
 0x16c   :  { %p652_p4 = pnand %p651_p3, %p645_p0 }
 0x16e   :  { %v184_v61 = vld [vmem:[#allocation3] ss:$2 sm:$0x7f]  ;;  %v186_v62 = vld [vmem:[#allocation3 + $0x1] ss:$2 sm:$0x7f] }
 0x16f   :  { %v189_v63 = vld [vmem:[#allocation3 + $0xe] ss:$2 sm:$0x7f]  ;;  %v191_v0 = vld [vmem:[#allocation3 + $0xf] ss:$2 sm:$0x7f]  ;;  %v187_v2 = vmax.f32 %v184_v61, %v186_v62 }
 0x170   :  { %v192_v1 = vmax.f32 %v189_v63, %v191_v0 }
 0x172   :  { %v194_v3 = vrot.slane %v192_v1, 1 }
 0x174   :  { %v197_v6 = vsel %vm196_vm5, %v187_v2, %v194_v3  ;;  %200 = vst.msk [vmem:[#allocation2 + $0x8] sm:$0x3f] %vm199_vm6, %v194_v3 }
 0x175   :  { %198 = vst.msk [vmem:[#allocation2] sm:$0xff] %vm62_vm2, %v197_v6 }
 0x17b   :  { %v217_v9 = vld [vmem:[#allocation2 + $0x9] sm:$0x1f] }
 0x17c   :  { %v216_v10 = vld [vmem:[#allocation2 + $0x8] sm:$0x1f]  ;;  %223 = vrot.lane.b32.xlu1 %v217_v9, %s672_s16  ;;  %v202_v11 = vld [vmem:[#allocation2 + $0x1] sm:$0x1f] }
 0x17d   :  { %v628_v12 = vpack.i.bf16 %v202_v11, %v216_v10  ;;  %v203_v13 = vld [vmem:[#allocation2 + $0x2] sm:$0x1f]  ;;  %v215_v17 = vld [vmem:[#allocation2 + $0x7] sm:$0x1f] }
 0x17e   :  { %v201_v18 = vld [vmem:[#allocation2] sm:$0x1f] }
 0x17f   :  { %629 = vrot.lane.b32.xlu0 %v628_v12, %s669_s2 }
 0x180   :  { %246 = vrot.lane.b32.xlu1 %v754_v48, %s673_s3 }
 0x183   :  { %209 = vrot.lane.b32.xlu0 %v203_v13, %s672_s16 }
 0x184   :  { %343 = vrot.lane.b32.xlu1 %v754_v48, %s674_s22 }
 0x188   :  { %457 = vrot.lane.b32.xlu1 %v754_v48, %s676_s5 }
 0x1ee   :  { %v224_v19 = vpop.permute.xlu1 %223 }
 0x1f1   :  { %v630_v14 = vpop.permute.xlu0 %629 }
 0x1f2   :  { %v632_v15 = vunpack.i.h.bf16 %v630_v14  ;;  %v631_v16 = vunpack.i.l.bf16 %v630_v14  ;;  %v247_v30 = vpop.permute.xlu1 %246 }
 0x1f4   :  { %v226_v20 = vsel %vm62_vm2, %v215_v17, %v631_v16  ;;  %v212_v21 = vsel %vm62_vm2, %v201_v18, %v632_v15 }
 0x1f5   :  { %v210_v22 = vpop.permute.xlu0 %209  ;;  %v227_v23 = vsel %vm213_vm9, %v226_v20, %v224_v19 }
 0x1f6   :  { %v214_v24 = vsel %vm213_vm9, %v212_v21, %v210_v22  ;;  %v229_v25 = vrot.slane %v227_v23, 3  ;;  %v344_v57 = vpop.permute.xlu1 %343 }
 0x1f8   :  { %v232_v26 = vsel %vm231_vm10, %v214_v24, %v229_v25 }
 0x1f9   :  { %v233_v27 = vpack.c.bf16 %v229_v25, %v232_v26 }
 0x1fa   :  { %v458_v9 = vpop.permute.xlu1 %457 }
 0x1fb   :  { %572 = vmatmul.mubr.msk.bf16.vlgmr.msra.gmra.mrb[0].mxu1 %vm249_vm11, %v233_v27 }
 0x1fc   :  { %587 = vmatprep.mubr.msk.bf16.mxu1 %vm671_vm8, %v670_v5  ;;  %584 = vmatpush3.bf16.msra.mxu1 %v638_v46 }
 0x1fd   :  { %585 = vmatprep.subr.bf16.mxu1 %v670_v5 }
 0x200   :  { %586 = vmatpush3.bf16.msra.mxu1 %v639_v54 }
 0x2ce   :  { %v291_v31 = vpop.f32.mrb[0].mxu1 }
 0x2cf   :  { %v292_v32 = vadd.f32 %v291_v31, %v247_v30  ;;  %v573_v33 = vpop.f32.mrb[1].mxu1 }
 0x2d0   :  { %v294_v34 = vpop.f32.mrb[2].mxu1 }
 0x2d1   :  { %v298_v35 = vmax.f32 %v292_v32, 0.0  ;;  %v295_v36 = vadd.f32 %v294_v34, %v247_v30  ;;  %v574_v37 = vpop.f32.mrb[3].mxu1 }
 0x2d3   :  { %300 = vst.msk [vmem:[#allocation3] sm:$0xff] %vm213_vm9, %v298_v35  ;;  %v299_v38 = vmax.f32 %v295_v36, 0.0 }
 0x2d5   :  { %302 = vst.msk [vmem:[#allocation3 + $0x8] sm:$0x3] %vm301_vm12, %v299_v38 }
 0x2da   :  { %v303_v39 = vld [vmem:[#allocation3] ss:$2 sm:$0x3]  ;;  %v304_v40 = vld [vmem:[#allocation3 + $0x1] ss:$2 sm:$0x3] }
 0x2db   :  { %v307_v41 = vld [vmem:[#allocation3 + $0x5] ss:$2 sm:$0x3]  ;;  %v305_v44 = vmax.f32 %v303_v39, %v304_v40 }
 0x2dc   :  { %v309_v42 = vld [vmem:[#allocation3 + $0x6] ss:$2 sm:$0x3] }
 0x2dd   :  { %v310_v43 = vmax.f32 %v307_v41, %v309_v42 }
 0x2df   :  { %v312_v45 = vrot.slane %v310_v43, 6 }
 0x2e1   :  { %v315_v47 = vsel %vm314_vm13, %v305_v44, %v312_v45 }
 0x2e2   :  { %317 = vst.msk [vmem:[#allocation2] sm:$0xf] %vm316_vm14, %v315_v47 }
 0x2e9   :  { %v320_v49 = vld [vmem:[#allocation2 + $0x1] ss:$2 sm:$0x3]  ;;  %v318_v51 = vld [vmem:[#allocation2] ss:$2 sm:$0x3] }
 0x2ea   :  { %322 = vrot.lane.b32.xlu0 %v320_v49, %s672_s16 }
 0x2ee   :  { %408 = vrot.lane.b32.xlu0 %v754_v48, %s675_s27 }
 0x35c   :  { %v323_v50 = vpop.permute.xlu0 %322 }
 0x35d   :  { %v325_v52 = vsel %vm213_vm9, %v318_v51, %v323_v50 }
 0x35e   :  { %v326_v53 = vpack.c.bf16 %v325_v52, %v325_v52 }
 0x360   :  { %580 = vmatmul.mubr.msk.bf16.vlgmr.msra.gmra.mrb[4].mxu0 %vm346_vm15, %v326_v53  ;;  %v409_v1 = vpop.permute.xlu0 %408 }
 0x361   :  { %593 = vmatprep.mubr.msk.bf16.mxu0 %vm671_vm8, %v670_v5  ;;  %592 = vmatpush3.bf16.msra.mxu0 %v464_v56 }
 0x433   :  { %v384_v58 = vpop.f32.mrb[4].mxu0 }
 0x434   :  { %v385_v59 = vadd.f32 %v384_v58, %v344_v57  ;;  %v581_v60 = vpop.f32.mrb[5].mxu0 }
 0x435   :  { %v387_v61 = vpop.f32.mrb[6].mxu0 }
 0x436   :  { %v390_v62 = vmax.f32 %v385_v59, 0.0  ;;  %v582_v63 = vpop.f32.mrb[7].mxu0 }
 0x438   :  { %v391_v0 = vpack.c.bf16 %v390_v62, %v390_v62 }
 0x43a   :  { %588 = vmatmul.mubr.msk.bf16.vlgmr.msra.gmra.mrb[4].mxu1 %vm346_vm15, %v391_v0 }
 0x50d   :  { %v448_v2 = vpop.f32.mrb[4].mxu1 }
 0x50e   :  { %v449_v3 = vadd.f32 %v448_v2, %v409_v1  ;;  %v589_v4 = vpop.f32.mrb[5].mxu1 }
 0x50f   :  { %v451_v5 = vpop.f32.mrb[6].mxu1 }
 0x510   :  { %v454_v6 = vmax.f32 %v449_v3, 0.0  ;;  %v590_v7 = vpop.f32.mrb[7].mxu1 }
 0x512   :  { %v455_v8 = vpack.c.bf16 %v454_v6, %v454_v6 }
 0x514   :  { %594 = vmatmul.mubr.msk.bf16.vlgmr.msra.gmra.mrb[8].mxu0 %vm62_vm2, %v455_v8 }
 0x5e7   :  { %v500_v10 = vpop.f32.mrb[8].mxu0 }
 0x5e8   :  { %v501_v11 = vadd.f32 %v500_v10, %v458_v9  ;;  %v595_v12 = vpop.f32.mrb[9].mxu0 }
 0x5e9   :  { %v503_v13 = vpop.f32.mrb[10].mxu0 }
 0x5ea   :  { %v596_v14 = vpop.f32.mrb[11].mxu0  ;;  %v507_v15 = vsel %vm506_vm0, %v501_v11, -inf }
 0x5eb   :  { %508 = vmax.xlane.f32.xlu0 %v507_v15 }
 0x678   :  { %v509_v48 = vpop.xlane.xlu0 %508 }
 0x679   :  { %v510_v16 = vsub.f32 %v501_v11, %v509_v48 }
 0x67b   :  { %v511_v17 = vmul.f32 1.442695, %v510_v16 }
 0x67d   :  { %640 = vpow2.f32 %v511_v17 }
 0x687   :  { %v641_v18 = vpop.eup %640 }
 0x688   :  { %v513_v19 = vsel %vm506_vm0, %v641_v18, 0.0 }
 0x689   :  { %514 = vadd.xlane.f32.xlu1 %v513_v19 }
 0x716   :  { %v515_v20 = vpop.xlane.xlu1 %514 }
 0x717   :  { %642 = vrcp.f32 %v515_v20 }
 0x721   :  { %v643_v21 = vpop.eup %642 }
 0x722   :  { %v517_v22 = vmul.f32 %v643_v21, %v641_v18 }
 0x724   :  { %518 = vst.msk [vmem:[#allocation4] sm:$0x3] %vm506_vm0, %v517_v22 }
 0x725   :  { %655 = shalt.err (!%p652_p4)
}
 0x726   :  { %s656_s9 = scalar_lea.hbm %s841_s7, 32 }
 0x727   :  { %p657_p5 = scmp.ne.s32.totalorder %s841_s7, %s656_s9  ;;  %p660_p6 = scmp.lt.u32.totalorder %s656_s9, %s841_s7 }
 0x729   :  { %p662_p7 = pnand %p660_p6, %p657_p5 }
 0x72b   :  { %665 = shalt.err (!%p662_p7)
}
 0x72c   :  { %528 = dma.vmem_to_hbm [thread:$0]  %s526_s28, 32, %s841_s7, [#allocation5]  }
 0x72d   :  { %666 = dma.done.wait [#allocation5], 32  }
 0x72e   :  { %667 = vsyncadd [#allocation5], 4294967264 }
 0x72f   :  { %532 = vsyncpa [#allocation5], 1 }

</bundles_post_ra>
